<compile_context>
chip_gen: v6e
topology: v6e:2x2x1
jax: 0.10.0
libtpu: 0.0.40
codegen_flags: <defaults>
</compile_context>

<pallas_src>
import functools

import jax
import jax.numpy as jnp
from jax.experimental import pallas as pl
from jax.experimental.pallas import tpu as pltpu

LANE = 128
STATS_TILE_ROWS = 1024      # (1024,128) f32 block; stats pass is already HBM-bound
TOPK_TILE_ROWS = 4096       # (4096,128) f32 = 2 MiB block for the streaming select
NPASS = 16                  # 4-way bisection passes; reaches bit-interval width 1
INF_BITS = 0x7F800000       # +inf bit pattern: upper bound for non-negative f32
VMEM_LIMIT = 32 * 1024 * 1024


def _bce_stats_kernel(pred_ref, gt_ref, mask_ref,
                      negloss_ref, ploss_ref, pcnt_ref, ncnt_ref):
    pred = pred_ref[...]                               # (tile, LANE) f32
    gt = gt_ref[...].astype(jnp.float32)               # uint8 {0,1} transport -> f32
    mask = mask_ref[...].astype(jnp.float32)

    # torch: positive = (gt*mask).byte(); negative = ((1-gt)*mask).byte()
    # gt/mask are binary, so no floor/byte truncation is needed and neg = mask-pos.
    pos = gt * mask
    neg = mask - pos
    one_m_gt = 1.0 - gt

    # binary_cross_entropy(reduction='none'); PyTorch clamps log terms at -100.
    log_p = jnp.maximum(jnp.log(pred), -100.0)
    log_1mp = jnp.maximum(jnp.log(1.0 - pred), -100.0)
    loss = -(gt * log_p + one_m_gt * log_1mp)

    # abs() clears any -0.0 so the bit-space top-k selection sees non-negative bits.
    negloss_ref[...] = jnp.abs(loss * neg)

    g = pred.shape[0] // 8
    # Per-tile (8, LANE) partials: pure cross-vreg VPU adds, no scalar RMW and no
    # cross-lane reduction in-kernel, so the grid stays fully "parallel".
    # Count partials stay exact in f32 (each sums at most tile_rows/8 ones).
    ploss_ref[0] = jnp.sum((loss * pos).reshape(g, 8, LANE), axis=0)
    pcnt_ref[0] = jnp.sum(pos.reshape(g, 8, LANE), axis=0)
    ncnt_ref[0] = jnp.sum(neg.reshape(g, 8, LANE), axis=0)


def _topk_select_kernel(k_ref, negloss_ref,
                        lo_ref, cnt_ref, sum_ref,
                        state, cnt_acc):
    # Exact torch.topk(...).sum() via 4-way bisection over the f32 bit space of the
    # non-negative negative-loss slab.  Invariants: count(x >= lo) >= k and
    # count(x >= hi) < k.  Passes 0..NPASS-1 count against 3 thresholds (count-only,
    # HBM-bound); pass NPASS measures count/sum of elements strictly above v_k.
    p = pl.program_id(0)
    i = pl.program_id(1)
    last = pl.num_programs(1) - 1
    k = k_ref[0]

    @pl.when(jnp.logical_and(p == 0, i == 0))
    def _():
        state[0] = jnp.int32(0)          # lo
        state[1] = jnp.int32(INF_BITS)   # hi

    @pl.when(i == 0)
    def _():
        cnt_acc[...] = jnp.zeros_like(cnt_acc)

    lo = state[0]
    hi = state[1]
    w = hi - lo
    m = jnp.right_shift(w, 1)
    t2 = lo + m
    t1 = lo + jnp.right_shift(m, 1)
    t3 = t2 + jnp.right_shift(w - m, 1)

    x = negloss_ref[...]                                    # (tile, LANE) f32, >= 0
    g = x.shape[0] // 8
    x3 = x.reshape(g, 8, LANE)
    xb3 = pltpu.bitcast(x, jnp.int32).reshape(g, 8, LANE)   # monotone in value

    @pl.when(p < NPASS)
    def _():
        cnt_acc[0] = cnt_acc[0] + jnp.sum((xb3 >= t1).astype(jnp.int32), axis=0)
        cnt_acc[1] = cnt_acc[1] + jnp.sum((xb3 >= t2).astype(jnp.int32), axis=0)
        cnt_acc[2] = cnt_acc[2] + jnp.sum((xb3 >= t3).astype(jnp.int32), axis=0)

    @pl.when(jnp.logical_and(p < NPASS, i == last))
    def _():
        c1 = jnp.sum(cnt_acc[0])                            # exact int32 totals
        c2 = jnp.sum(cnt_acc[1])
        c3 = jnp.sum(cnt_acc[2])
        # Pick the highest bracket whose lower threshold still has >= k elements.
        new_lo = jnp.where(c3 >= k, t3,
                 jnp.where(c2 >= k, t2,
                 jnp.where(c1 >= k, t1, lo)))
        new_hi = jnp.where(c3 >= k, hi,
                 jnp.where(c2 >= k, t3,
                 jnp.where(c1 >= k, t2, t1)))
        state[0] = new_lo
        state[1] = new_hi

    @pl.when(jnp.logical_and(p == NPASS, i == 0))
    def _():
        lo_ref[...] = jnp.full((8, LANE), lo, dtype=jnp.int32)
        cnt_ref[...] = jnp.zeros_like(cnt_ref)
        sum_ref[...] = jnp.zeros_like(sum_ref)

    @pl.when(p == NPASS)
    def _():
        # After NPASS counting passes hi == lo + 1, so this measures count/sum of
        # elements strictly greater than the k-th largest value (bits == lo).
        ge = xb3 >= hi
        cnt_ref[...] = cnt_ref[...] + jnp.sum(ge.astype(jnp.int32), axis=0)
        sum_ref[...] = sum_ref[...] + jnp.sum(jnp.where(ge, x3, 0.0), axis=0)


def _round_up(v, m):
    return ((v + m - 1) // m) * m


def _pad_to_slab(x, pad_value, total, dtype):
    flat = x.reshape(-1).astype(dtype)
    flat = jnp.pad(flat, (0, total - flat.shape[0]), constant_values=pad_value)
    return flat.reshape(-1, LANE)


@functools.partial(jax.jit, static_argnames=("negative_ratio", "eps"))
def balance_cross_entropy_loss(pred, gt, mask, negative_ratio=3.0, eps=1e-6):
    if pred.ndim == 4:
        pred = pred[:, 0, :, :]

    n = pred.size
    rows = pl.cdiv(n, LANE)
    # Stats tile: multiple of 32 rows (uint8 sublane packing); kept moderate so the
    # elementwise intermediates stay well inside scoped VMEM.  Top-k tile: as large
    # as comfortably fits, since that kernel is the multi-pass, bandwidth-dominant
    # one.  tile_s always divides tile_t, and tile_t divides R.
    tile_s = min(STATS_TILE_ROWS, _round_up(rows, 32))
    tile_t = min(TOPK_TILE_ROWS, _round_up(rows, tile_s))
    R = _round_up(rows, tile_t)
    total = R * LANE
    n_stats = R // tile_s
    n_topk = R // tile_t

    # Neutral padding: pred=0.5 (finite loss), gt=mask=0 -> pos=neg=0, negloss=0.
    pred_p = _pad_to_slab(pred, 0.5, total, jnp.float32)
    gt_p = _pad_to_slab(gt, 0, total, jnp.uint8)       # binary maps: exact in uint8
    mask_p = _pad_to_slab(mask, 0, total, jnp.uint8)

    negloss, ploss_p, pcnt_p, ncnt_p = pl.pallas_call(
        _bce_stats_kernel,
        out_shape=(
            jax.ShapeDtypeStruct((R, LANE), jnp.float32),
            jax.ShapeDtypeStruct((n_stats, 8, LANE), jnp.float32),
            jax.ShapeDtypeStruct((n_stats, 8, LANE), jnp.float32),
            jax.ShapeDtypeStruct((n_stats, 8, LANE), jnp.float32),
        ),
        grid_spec=pltpu.PrefetchScalarGridSpec(
            num_scalar_prefetch=0,
            grid=(n_stats,),
            in_specs=[
                pl.BlockSpec((tile_s, LANE), lambda i: (i, 0)),
                pl.BlockSpec((tile_s, LANE), lambda i: (i, 0)),
                pl.BlockSpec((tile_s, LANE), lambda i: (i, 0)),
            ],
            out_specs=(
                pl.BlockSpec((tile_s, LANE), lambda i: (i, 0)),
                pl.BlockSpec((1, 8, LANE), lambda i: (i, 0, 0)),
                pl.BlockSpec((1, 8, LANE), lambda i: (i, 0, 0)),
                pl.BlockSpec((1, 8, LANE), lambda i: (i, 0, 0)),
            ),
        ),
        compiler_params=pltpu.CompilerParams(
            dimension_semantics=("parallel",),
            vmem_limit_bytes=VMEM_LIMIT),
    )(pred_p, gt_p, mask_p)

    # Each f32 partial holds a small exact integer; cast-then-sum is exact int32.
    positive_count = jnp.sum(pcnt_p.astype(jnp.int32))
    negative_total = jnp.sum(ncnt_p.astype(jnp.int32))
    posloss_sum = jnp.sum(ploss_p)

    # torch: min(int(negative.sum()), int(positive_count * negative_ratio))
    neg_cap = jnp.floor(
        positive_count.astype(jnp.float32) * negative_ratio).astype(jnp.int32)
    negative_count = jnp.minimum(negative_total, neg_cap)
    # k >= 1 keeps the bisection invariants valid; k == 0 results are discarded below.
    k_bis = jnp.maximum(negative_count, 1).reshape(1)

    lo_vec, cnt_vec, sum_vec = pl.pallas_call(
        _topk_select_kernel,
        out_shape=(
            jax.ShapeDtypeStruct((8, LANE), jnp.int32),
            jax.ShapeDtypeStruct((8, LANE), jnp.int32),
            jax.ShapeDtypeStruct((8, LANE), jnp.float32),
        ),
        grid_spec=pltpu.PrefetchScalarGridSpec(
            num_scalar_prefetch=1,
            grid=(NPASS + 1, n_topk),
            in_specs=[pl.BlockSpec((tile_t, LANE), lambda p, i, k: (i, 0))],
            out_specs=(
                pl.BlockSpec((8, LANE), lambda p, i, k: (0, 0)),
                pl.BlockSpec((8, LANE), lambda p, i, k: (0, 0)),
                pl.BlockSpec((8, LANE), lambda p, i, k: (0, 0)),
            ),
            scratch_shapes=[
                pltpu.SMEM((2,), jnp.int32),           # (lo, hi) bisection state
                pltpu.VMEM((3, 8, LANE), jnp.int32),   # per-threshold count partials
            ],
        ),
        compiler_params=pltpu.CompilerParams(
            dimension_semantics=("arbitrary", "arbitrary"),
            vmem_limit_bytes=VMEM_LIMIT),
    )(k_bis, negloss)

    # Finish the exact top-k sum: sum(x > v_k) + (k - count(x > v_k)) * v_k
    v_k = jax.lax.bitcast_convert_type(lo_vec[0, 0], jnp.float32)
    cnt_gt = jnp.sum(cnt_vec).astype(jnp.float32)
    sum_gt = jnp.sum(sum_vec)
    k_f = negative_count.astype(jnp.float32)
    topk_sum = jnp.where(negative_count > 0, sum_gt + (k_f - cnt_gt) * v_k, 0.0)

    denom = positive_count.astype(jnp.float32) + k_f + eps
    return (posloss_sum + topk_sum) / denom


def _reference_loss(pred, gt, mask, negative_ratio=3.0, eps=1e-6):
    # Pure-JAX reference mirroring the PyTorch module (uses a full sort for top-k).
    if pred.ndim == 4:
        pred = pred[:, 0, :, :]
    positive = jnp.floor(gt * mask)
    negative = jnp.floor((1.0 - gt) * mask)
    positive_count = int(jnp.sum(positive))
    negative_count = min(int(jnp.sum(negative)), int(positive_count * negative_ratio))
    log_p = jnp.maximum(jnp.log(pred), -100.0)
    log_1mp = jnp.maximum(jnp.log(1.0 - pred), -100.0)
    loss = -(gt * log_p + (1.0 - gt) * log_1mp)
    positive_loss = jnp.sum(loss * positive)
    neg_sorted = jnp.sort((loss * negative).reshape(-1))[::-1]
    topk = jnp.sum(neg_sorted[:negative_count])
    return (positive_loss + topk) / (positive_count + negative_count + eps)


if __name__ == "__main__":
    key = jax.random.PRNGKey(0)
    k1, k2, k3 = jax.random.split(key, 3)

    N, C, H, W = 2, 4, 16, 16
    # pred: probabilities in (0, 1)
    pred = jax.nn.sigmoid(jax.random.normal(k1, (N, C, H, W), dtype=jnp.float32))
    # gt: binary ground-truth map
    gt = (jax.random.uniform(k2, (N, H, W)) < 0.2).astype(jnp.float32)
    # mask: binary valid-region mask (mostly ones)
    mask = (jax.random.uniform(k3, (N, H, W)) < 0.9).astype(jnp.float32)

    loss = balance_cross_entropy_loss(pred, gt, mask)
    loss = jax.block_until_ready(loss)

    ref = _reference_loss(pred, gt, mask)
    assert jnp.isfinite(loss), "loss is not finite"
    assert abs(float(loss) - float(ref)) <= 1e-4 * max(1.0, abs(float(ref))), (
        float(loss), float(ref))
    print("KERNEL_OK")
</pallas_src>

<mosaic_0001>
module attributes {stable_mosaic.version = 11 : i64} {
  func.func @_bce_stats_kernel(%arg0: i32, %arg1: memref<32x128xf32, #tpu.memory_space<vmem>>, %arg2: memref<32x128xi8, #tpu.memory_space<vmem>>, %arg3: memref<32x128xi8, #tpu.memory_space<vmem>>, %arg4: memref<32x128xf32, #tpu.memory_space<vmem>>, %arg5: memref<1x8x128xf32, #tpu.memory_space<vmem>>, %arg6: memref<1x8x128xf32, #tpu.memory_space<vmem>>, %arg7: memref<1x8x128xf32, #tpu.memory_space<vmem>>) attributes {dimension_semantics = [#tpu.dimension_semantics<parallel>], iteration_bounds = array<i64: 1>, scalar_prefetch = 0 : i64, scratch_operands = 0 : i64, tpu.core_type = #tpu.core_type<tc>, window_params = [{transform_indices = @transform_0, window_bounds = array<i64: 32, 128>}, {transform_indices = @transform_1, window_bounds = array<i64: 32, 128>}, {transform_indices = @transform_2, window_bounds = array<i64: 32, 128>}, {transform_indices = @transform_3, window_bounds = array<i64: 32, 128>}, {transform_indices = @transform_4, window_bounds = array<i64: 1, 8, 128>}, {transform_indices = @transform_5, window_bounds = array<i64: 1, 8, 128>}, {transform_indices = @transform_6, window_bounds = array<i64: 1, 8, 128>}]} {
    %c0 = arith.constant 0 : index
    %c0_0 = arith.constant 0 : index
    %0 = vector.load %arg1[%c0, %c0_0] : memref<32x128xf32, #tpu.memory_space<vmem>>, vector<32x128xf32>
    %c0_1 = arith.constant 0 : index
    %c0_2 = arith.constant 0 : index
    %1 = vector.load %arg2[%c0_1, %c0_2] : memref<32x128xi8, #tpu.memory_space<vmem>>, vector<32x128xi8>
    %2 = arith.uitofp %1 : vector<32x128xi8> to vector<32x128xf32>
    %c0_3 = arith.constant 0 : index
    %c0_4 = arith.constant 0 : index
    %3 = vector.load %arg3[%c0_3, %c0_4] : memref<32x128xi8, #tpu.memory_space<vmem>>, vector<32x128xi8>
    %4 = arith.uitofp %3 : vector<32x128xi8> to vector<32x128xf32>
    %5 = arith.mulf %2, %4 : vector<32x128xf32>
    %6 = arith.subf %4, %5 : vector<32x128xf32>
    %cst = arith.constant 1.000000e+00 : f32
    %7 = vector.broadcast %cst : f32 to vector<32x128xf32>
    %8 = arith.subf %7, %2 : vector<32x128xf32>
    %9 = math.log %0 : vector<32x128xf32>
    %cst_5 = arith.constant -1.000000e+02 : f32
    %10 = vector.broadcast %cst_5 : f32 to vector<32x128xf32>
    %11 = arith.maximumf %9, %10 : vector<32x128xf32>
    %cst_6 = arith.constant 1.000000e+00 : f32
    %12 = vector.broadcast %cst_6 : f32 to vector<32x128xf32>
    %13 = arith.subf %12, %0 : vector<32x128xf32>
    %14 = math.log %13 : vector<32x128xf32>
    %cst_7 = arith.constant -1.000000e+02 : f32
    %15 = vector.broadcast %cst_7 : f32 to vector<32x128xf32>
    %16 = arith.maximumf %14, %15 : vector<32x128xf32>
    %17 = arith.mulf %2, %11 : vector<32x128xf32>
    %18 = arith.mulf %8, %16 : vector<32x128xf32>
    %19 = arith.addf %17, %18 : vector<32x128xf32>
    %cst_8 = arith.constant 0.000000e+00 : f32
    %20 = vector.broadcast %cst_8 : f32 to vector<32x128xf32>
    %21 = arith.subf %20, %19 : vector<32x128xf32>
    %22 = arith.mulf %21, %6 : vector<32x128xf32>
    %23 = math.absf %22 : vector<32x128xf32>
    %c0_9 = arith.constant 0 : index
    %c0_10 = arith.constant 0 : index
    %24 = vector.load %arg4[%c0_9, %c0_10] : memref<32x128xf32, #tpu.memory_space<vmem>>, vector<32x128xf32>
    tpu.vector_store %arg4[%c0_9, %c0_10], %23 {strides = array<i32>} : memref<32x128xf32, #tpu.memory_space<vmem>>, vector<32x128xf32>,
    %25 = arith.mulf %21, %5 : vector<32x128xf32>
    %26 = vector.shape_cast %25 : vector<32x128xf32> to vector<4x8x128xf32>
    %cst_11 = arith.constant dense<0.000000e+00> : vector<8x128xf32>
    %27 = vector.multi_reduction <add>, %26, %cst_11 [0] : vector<4x8x128xf32> to vector<8x128xf32>
    %c0_12 = arith.constant 0 : index
    %c0_13 = arith.constant 0 : index
    %c0_14 = arith.constant 0 : index
    %28 = vector.load %arg5[%c0_12, %c0_13, %c0_14] : memref<1x8x128xf32, #tpu.memory_space<vmem>>, vector<1x8x128xf32>
    %29 = vector.shape_cast %28 : vector<1x8x128xf32> to vector<8x128xf32>
    %30 = vector.shape_cast %27 : vector<8x128xf32> to vector<1x8x128xf32>
    tpu.vector_store %arg5[%c0_12, %c0_13, %c0_14], %30 {strides = array<i32>} : memref<1x8x128xf32, #tpu.memory_space<vmem>>, vector<1x8x128xf32>,
    %31 = vector.shape_cast %5 : vector<32x128xf32> to vector<4x8x128xf32>
    %cst_15 = arith.constant dense<0.000000e+00> : vector<8x128xf32>
    %32 = vector.multi_reduction <add>, %31, %cst_15 [0] : vector<4x8x128xf32> to vector<8x128xf32>
    %c0_16 = arith.constant 0 : index
    %c0_17 = arith.constant 0 : index
    %c0_18 = arith.constant 0 : index
    %33 = vector.load %arg6[%c0_16, %c0_17, %c0_18] : memref<1x8x128xf32, #tpu.memory_space<vmem>>, vector<1x8x128xf32>
    %34 = vector.shape_cast %33 : vector<1x8x128xf32> to vector<8x128xf32>
    %35 = vector.shape_cast %32 : vector<8x128xf32> to vector<1x8x128xf32>
    tpu.vector_store %arg6[%c0_16, %c0_17, %c0_18], %35 {strides = array<i32>} : memref<1x8x128xf32, #tpu.memory_space<vmem>>, vector<1x8x128xf32>,
    %36 = vector.shape_cast %6 : vector<32x128xf32> to vector<4x8x128xf32>
    %cst_19 = arith.constant dense<0.000000e+00> : vector<8x128xf32>
    %37 = vector.multi_reduction <add>, %36, %cst_19 [0] : vector<4x8x128xf32> to vector<8x128xf32>
    %c0_20 = arith.constant 0 : index
    %c0_21 = arith.constant 0 : index
    %c0_22 = arith.constant 0 : index
    %38 = vector.load %arg7[%c0_20, %c0_21, %c0_22] : memref<1x8x128xf32, #tpu.memory_space<vmem>>, vector<1x8x128xf32>
    %39 = vector.shape_cast %38 : vector<1x8x128xf32> to vector<8x128xf32>
    %40 = vector.shape_cast %37 : vector<8x128xf32> to vector<1x8x128xf32>
    tpu.vector_store %arg7[%c0_20, %c0_21, %c0_22], %40 {strides = array<i32>} : memref<1x8x128xf32, #tpu.memory_space<vmem>>, vector<1x8x128xf32>,
    return
  }
  func.func @transform_0(%arg0: i32) -> (i32, i32) {
    %c0_i32 = arith.constant 0 : i32
    %c0_i32_0 = arith.constant 0 : i32
    return %arg0, %c0_i32 : i32, i32
  }
  func.func @transform_1(%arg0: i32) -> (i32, i32) {
    %c0_i32 = arith.constant 0 : i32
    %c0_i32_0 = arith.constant 0 : i32
    return %arg0, %c0_i32 : i32, i32
  }
  func.func @transform_2(%arg0: i32) -> (i32, i32) {
    %c0_i32 = arith.constant 0 : i32
    %c0_i32_0 = arith.constant 0 : i32
    return %arg0, %c0_i32 : i32, i32
  }
  func.func @transform_3(%arg0: i32) -> (i32, i32) {
    %c0_i32 = arith.constant 0 : i32
    %c0_i32_0 = arith.constant 0 : i32
    return %arg0, %c0_i32 : i32, i32
  }
  func.func @transform_4(%arg0: i32) -> (i32, i32, i32) {
    %c0_i32 = arith.constant 0 : i32
    %c0_i32_0 = arith.constant 0 : i32
    %c0_i32_1 = arith.constant 0 : i32
    return %arg0, %c0_i32, %c0_i32_0 : i32, i32, i32
  }
  func.func @transform_5(%arg0: i32) -> (i32, i32, i32) {
    %c0_i32 = arith.constant 0 : i32
    %c0_i32_0 = arith.constant 0 : i32
    %c0_i32_1 = arith.constant 0 : i32
    return %arg0, %c0_i32, %c0_i32_0 : i32, i32, i32
  }
  func.func @transform_6(%arg0: i32) -> (i32, i32, i32) {
    %c0_i32 = arith.constant 0 : i32
    %c0_i32_0 = arith.constant 0 : i32
    %c0_i32_1 = arith.constant 0 : i32
    return %arg0, %c0_i32, %c0_i32_0 : i32, i32, i32
  }
}

module attributes {stable_mosaic.version = 11 : i64} {
  func.func @_topk_select_kernel(%arg0: i32, %arg1: i32, %arg2: memref<1xi32, #tpu.memory_space<smem>>, %arg3: memref<32x128xf32, #tpu.memory_space<vmem>>, %arg4: memref<8x128xi32, #tpu.memory_space<vmem>>, %arg5: memref<8x128xi32, #tpu.memory_space<vmem>>, %arg6: memref<8x128xf32, #tpu.memory_space<vmem>>, %arg7: memref<2xi32, #tpu.memory_space<smem>>, %arg8: memref<3x8x128xi32, #tpu.memory_space<vmem>>) attributes {dimension_semantics = [#tpu.dimension_semantics<arbitrary>, #tpu.dimension_semantics<arbitrary>], iteration_bounds = array<i64: 17, 1>, scalar_prefetch = 1 : i64, scratch_operands = 2 : i64, tpu.core_type = #tpu.core_type<tc>, window_params = [{transform_indices = @transform_0, window_bounds = array<i64: 32, 128>}, {pipeline_mode = #tpu.pipeline_mode<synchronous>, transform_indices = @transform_1, window_bounds = array<i64: 8, 128>}, {pipeline_mode = #tpu.pipeline_mode<synchronous>, transform_indices = @transform_2, window_bounds = array<i64: 8, 128>}, {pipeline_mode = #tpu.pipeline_mode<synchronous>, transform_indices = @transform_3, window_bounds = array<i64: 8, 128>}]} {
    %c0 = arith.constant 0 : index
    %0 = memref.load %arg2[%c0] : memref<1xi32, #tpu.memory_space<smem>>
    %c0_i32 = arith.constant 0 : i32
    %1 = arith.cmpi eq, %arg0, %c0_i32 : i32
    %c0_i32_0 = arith.constant 0 : i32
    %2 = arith.cmpi eq, %arg1, %c0_i32_0 : i32
    %3 = arith.andi %1, %2 : i1
    %4 = arith.extui %3 : i1 to i32
    %c0_i32_1 = arith.constant 0 : i32
    %5 = arith.cmpi ne, %4, %c0_i32_1 : i32
    scf.if %5 {
      %c0_i32_18 = arith.constant 0 : i32
      %c0_19 = arith.constant 0 : index
      %39 = memref.load %arg7[%c0_19] : memref<2xi32, #tpu.memory_space<smem>>
      memref.store %c0_i32_18, %arg7[%c0_19] : memref<2xi32, #tpu.memory_space<smem>>
      %c2139095040_i32 = arith.constant 2139095040 : i32
      %c1_20 = arith.constant 1 : index
      %40 = memref.load %arg7[%c1_20] : memref<2xi32, #tpu.memory_space<smem>>
      memref.store %c2139095040_i32, %arg7[%c1_20] : memref<2xi32, #tpu.memory_space<smem>>
    } else {
    }
    %c0_i32_2 = arith.constant 0 : i32
    %6 = arith.cmpi eq, %arg1, %c0_i32_2 : i32
    %7 = arith.extui %6 : i1 to i32
    %c0_i32_3 = arith.constant 0 : i32
    %8 = arith.cmpi ne, %7, %c0_i32_3 : i32
    scf.if %8 {
      %c0_i32_18 = arith.constant 0 : i32
      %39 = vector.broadcast %c0_i32_18 : i32 to vector<3x8x128xi32>
      %c0_19 = arith.constant 0 : index
      %c0_20 = arith.constant 0 : index
      %c0_21 = arith.constant 0 : index
      %40 = vector.load %arg8[%c0_19, %c0_20, %c0_21] : memref<3x8x128xi32, #tpu.memory_space<vmem>>, vector<3x8x128xi32>
      tpu.vector_store %arg8[%c0_19, %c0_20, %c0_21], %39 {strides = array<i32>} : memref<3x8x128xi32, #tpu.memory_space<vmem>>, vector<3x8x128xi32>,
    } else {
    }
    %c0_4 = arith.constant 0 : index
    %9 = memref.load %arg7[%c0_4] : memref<2xi32, #tpu.memory_space<smem>>
    %c1 = arith.constant 1 : index
    %10 = memref.load %arg7[%c1] : memref<2xi32, #tpu.memory_space<smem>>
    %11 = arith.subi %10, %9 : i32
    %c1_i32 = arith.constant 1 : i32
    %12 = arith.shrsi %11, %c1_i32 : i32
    %13 = arith.addi %9, %12 : i32
    %c1_i32_5 = arith.constant 1 : i32
    %14 = arith.shrsi %12, %c1_i32_5 : i32
    %15 = arith.addi %9, %14 : i32
    %16 = arith.subi %11, %12 : i32
    %c1_i32_6 = arith.constant 1 : i32
    %17 = arith.shrsi %16, %c1_i32_6 : i32
    %18 = arith.addi %13, %17 : i32
    %c0_7 = arith.constant 0 : index
    %c0_8 = arith.constant 0 : index
    %19 = vector.load %arg3[%c0_7, %c0_8] : memref<32x128xf32, #tpu.memory_space<vmem>>, vector<32x128xf32>
    %20 = vector.shape_cast %19 : vector<32x128xf32> to vector<4x8x128xf32>
    %21 = tpu.bitcast %19 : vector<32x128xf32> -> vector<32x128xi32>
    %22 = vector.shape_cast %21 : vector<32x128xi32> to vector<4x8x128xi32>
    %c16_i32 = arith.constant 16 : i32
    %23 = arith.cmpi slt, %arg0, %c16_i32 : i32
    %24 = arith.extui %23 : i1 to i32
    %c0_i32_9 = arith.constant 0 : i32
    %25 = arith.cmpi ne, %24, %c0_i32_9 : i32
    scf.if %25 {
      %c0_18 = arith.constant 0 : index
      %c0_19 = arith.constant 0 : index
      %c0_20 = arith.constant 0 : index
      %39 = vector.load %arg8[%c0_18, %c0_19, %c0_20] : memref<3x8x128xi32, #tpu.memory_space<vmem>>, vector<1x8x128xi32>
      %40 = vector.shape_cast %39 : vector<1x8x128xi32> to vector<8x128xi32>
      %41 = vector.broadcast %15 : i32 to vector<4x8x128xi32>
      %42 = arith.cmpi sge, %22, %41 : vector<4x8x128xi32>
      %43 = arith.extui %42 : vector<4x8x128xi1> to vector<4x8x128xi32>
      %cst = arith.constant dense<0> : vector<8x128xi32>
      %44 = vector.multi_reduction <add>, %43, %cst [0] : vector<4x8x128xi32> to vector<8x128xi32>
      %45 = arith.addi %40, %44 : vector<8x128xi32>
      %c0_21 = arith.constant 0 : index
      %c0_22 = arith.constant 0 : index
      %c0_23 = arith.constant 0 : index
      %46 = vector.load %arg8[%c0_21, %c0_22, %c0_23] : memref<3x8x128xi32, #tpu.memory_space<vmem>>, vector<1x8x128xi32>
      %47 = vector.shape_cast %46 : vector<1x8x128xi32> to vector<8x128xi32>
      %48 = vector.shape_cast %45 : vector<8x128xi32> to vector<1x8x128xi32>
      tpu.vector_store %arg8[%c0_21, %c0_22, %c0_23], %48 {strides = array<i32>} : memref<3x8x128xi32, #tpu.memory_space<vmem>>, vector<1x8x128xi32>,
      %c1_24 = arith.constant 1 : index
      %c0_25 = arith.constant 0 : index
      %c0_26 = arith.constant 0 : index
      %49 = vector.load %arg8[%c1_24, %c0_25, %c0_26] : memref<3x8x128xi32, #tpu.memory_space<vmem>>, vector<1x8x128xi32>
      %50 = vector.shape_cast %49 : vector<1x8x128xi32> to vector<8x128xi32>
      %51 = vector.broadcast %13 : i32 to vector<4x8x128xi32>
      %52 = arith.cmpi sge, %22, %51 : vector<4x8x128xi32>
      %53 = arith.extui %52 : vector<4x8x128xi1> to vector<4x8x128xi32>
      %cst_27 = arith.constant dense<0> : vector<8x128xi32>
      %54 = vector.multi_reduction <add>, %53, %cst_27 [0] : vector<4x8x128xi32> to vector<8x128xi32>
      %55 = arith.addi %50, %54 : vector<8x128xi32>
      %c1_28 = arith.constant 1 : index
      %c0_29 = arith.constant 0 : index
      %c0_30 = arith.constant 0 : index
      %56 = vector.load %arg8[%c1_28, %c0_29, %c0_30] : memref<3x8x128xi32, #tpu.memory_space<vmem>>, vector<1x8x128xi32>
      %57 = vector.shape_cast %56 : vector<1x8x128xi32> to vector<8x128xi32>
      %58 = vector.shape_cast %55 : vector<8x128xi32> to vector<1x8x128xi32>
      tpu.vector_store %arg8[%c1_28, %c0_29, %c0_30], %58 {strides = array<i32>} : memref<3x8x128xi32, #tpu.memory_space<vmem>>, vector<1x8x128xi32>,
      %c2 = arith.constant 2 : index
      %c0_31 = arith.constant 0 : index
      %c0_32 = arith.constant 0 : index
      %59 = vector.load %arg8[%c2, %c0_31, %c0_32] : memref<3x8x128xi32, #tpu.memory_space<vmem>>, vector<1x8x128xi32>
      %60 = vector.shape_cast %59 : vector<1x8x128xi32> to vector<8x128xi32>
      %61 = vector.broadcast %18 : i32 to vector<4x8x128xi32>
      %62 = arith.cmpi sge, %22, %61 : vector<4x8x128xi32>
      %63 = arith.extui %62 : vector<4x8x128xi1> to vector<4x8x128xi32>
      %cst_33 = arith.constant dense<0> : vector<8x128xi32>
      %64 = vector.multi_reduction <add>, %63, %cst_33 [0] : vector<4x8x128xi32> to vector<8x128xi32>
      %65 = arith.addi %60, %64 : vector<8x128xi32>
      %c2_34 = arith.constant 2 : index
      %c0_35 = arith.constant 0 : index
      %c0_36 = arith.constant 0 : index
      %66 = vector.load %arg8[%c2_34, %c0_35, %c0_36] : memref<3x8x128xi32, #tpu.memory_space<vmem>>, vector<1x8x128xi32>
      %67 = vector.shape_cast %66 : vector<1x8x128xi32> to vector<8x128xi32>
      %68 = vector.shape_cast %65 : vector<8x128xi32> to vector<1x8x128xi32>
      tpu.vector_store %arg8[%c2_34, %c0_35, %c0_36], %68 {strides = array<i32>} : memref<3x8x128xi32, #tpu.memory_space<vmem>>, vector<1x8x128xi32>,
    } else {
    }
    %c16_i32_10 = arith.constant 16 : i32
    %26 = arith.cmpi slt, %arg0, %c16_i32_10 : i32
    %c0_i32_11 = arith.constant 0 : i32
    %27 = arith.cmpi eq, %arg1, %c0_i32_11 : i32
    %28 = arith.andi %26, %27 : i1
    %29 = arith.extui %28 : i1 to i32
    %c0_i32_12 = arith.constant 0 : i32
    %30 = arith.cmpi ne, %29, %c0_i32_12 : i32
    scf.if %30 {
      %c0_18 = arith.constant 0 : index
      %c0_19 = arith.constant 0 : index
      %c0_20 = arith.constant 0 : index
      %39 = vector.load %arg8[%c0_18, %c0_19, %c0_20] : memref<3x8x128xi32, #tpu.memory_space<vmem>>, vector<1x8x128xi32>
      %40 = vector.shape_cast %39 : vector<1x8x128xi32> to vector<8x128xi32>
      %41 = vector.shape_cast %40 : vector<8x128xi32> to vector<1x8x128xi32>
      %cst = arith.constant dense<0> : vector<1xi32>
      %42 = vector.multi_reduction <add>, %41, %cst [1, 2] : vector<1x8x128xi32> to vector<1xi32>
      %43 = vector.shape_cast %42 : vector<1xi32> to vector<1x1x1xi32>
      %44 = vector.extract %43[0, 0, 0] : i32 from vector<1x1x1xi32>
      %c1_21 = arith.constant 1 : index
      %c0_22 = arith.constant 0 : index
      %c0_23 = arith.constant 0 : index
      %45 = vector.load %arg8[%c1_21, %c0_22, %c0_23] : memref<3x8x128xi32, #tpu.memory_space<vmem>>, vector<1x8x128xi32>
      %46 = vector.shape_cast %45 : vector<1x8x128xi32> to vector<8x128xi32>
      %47 = vector.shape_cast %46 : vector<8x128xi32> to vector<1x8x128xi32>
      %cst_24 = arith.constant dense<0> : vector<1xi32>
      %48 = vector.multi_reduction <add>, %47, %cst_24 [1, 2] : vector<1x8x128xi32> to vector<1xi32>
      %49 = vector.shape_cast %48 : vector<1xi32> to vector<1x1x1xi32>
      %50 = vector.extract %49[0, 0, 0] : i32 from vector<1x1x1xi32>
      %c2 = arith.constant 2 : index
      %c0_25 = arith.constant 0 : index
      %c0_26 = arith.constant 0 : index
      %51 = vector.load %arg8[%c2, %c0_25, %c0_26] : memref<3x8x128xi32, #tpu.memory_space<vmem>>, vector<1x8x128xi32>
      %52 = vector.shape_cast %51 : vector<1x8x128xi32> to vector<8x128xi32>
      %53 = vector.shape_cast %52 : vector<8x128xi32> to vector<1x8x128xi32>
      %cst_27 = arith.constant dense<0> : vector<1xi32>
      %54 = vector.multi_reduction <add>, %53, %cst_27 [1, 2] : vector<1x8x128xi32> to vector<1xi32>
      %55 = vector.shape_cast %54 : vector<1xi32> to vector<1x1x1xi32>
      %56 = vector.extract %55[0, 0, 0] : i32 from vector<1x1x1xi32>
      %57 = arith.cmpi sge, %56, %0 : i32
      %58 = arith.cmpi sge, %50, %0 : i32
      %59 = arith.cmpi sge, %44, %0 : i32
      %60 = arith.select %59, %15, %9 : i32
      %61 = arith.select %58, %13, %60 : i32
      %62 = arith.select %57, %18, %61 : i32
      %63 = arith.cmpi sge, %56, %0 : i32
      %64 = arith.cmpi sge, %50, %0 : i32
      %65 = arith.cmpi sge, %44, %0 : i32
      %66 = arith.select %65, %13, %15 : i32
      %67 = arith.select %64, %18, %66 : i32
      %68 = arith.select %63, %10, %67 : i32
      %c0_28 = arith.constant 0 : index
      %69 = memref.load %arg7[%c0_28] : memref<2xi32, #tpu.memory_space<smem>>
      memref.store %62, %arg7[%c0_28] : memref<2xi32, #tpu.memory_space<smem>>
      %c1_29 = arith.constant 1 : index
      %70 = memref.load %arg7[%c1_29] : memref<2xi32, #tpu.memory_space<smem>>
      memref.store %68, %arg7[%c1_29] : memref<2xi32, #tpu.memory_space<smem>>
    } else {
    }
    %c16_i32_13 = arith.constant 16 : i32
    %31 = arith.cmpi eq, %arg0, %c16_i32_13 : i32
    %c0_i32_14 = arith.constant 0 : i32
    %32 = arith.cmpi eq, %arg1, %c0_i32_14 : i32
    %33 = arith.andi %31, %32 : i1
    %34 = arith.extui %33 : i1 to i32
    %c0_i32_15 = arith.constant 0 : i32
    %35 = arith.cmpi ne, %34, %c0_i32_15 : i32
    scf.if %35 {
      %39 = vector.broadcast %9 : i32 to vector<8x128xi32>
      %c0_18 = arith.constant 0 : index
      %c0_19 = arith.constant 0 : index
      %40 = vector.load %arg4[%c0_18, %c0_19] : memref<8x128xi32, #tpu.memory_space<vmem>>, vector<8x128xi32>
      tpu.vector_store %arg4[%c0_18, %c0_19], %39 {strides = array<i32>} : memref<8x128xi32, #tpu.memory_space<vmem>>, vector<8x128xi32>,
      %c0_i32_20 = arith.constant 0 : i32
      %41 = vector.broadcast %c0_i32_20 : i32 to vector<8x128xi32>
      %c0_21 = arith.constant 0 : index
      %c0_22 = arith.constant 0 : index
      %42 = vector.load %arg5[%c0_21, %c0_22] : memref<8x128xi32, #tpu.memory_space<vmem>>, vector<8x128xi32>
      tpu.vector_store %arg5[%c0_21, %c0_22], %41 {strides = array<i32>} : memref<8x128xi32, #tpu.memory_space<vmem>>, vector<8x128xi32>,
      %cst = arith.constant 0.000000e+00 : f32
      %43 = vector.broadcast %cst : f32 to vector<8x128xf32>
      %c0_23 = arith.constant 0 : index
      %c0_24 = arith.constant 0 : index
      %44 = vector.load %arg6[%c0_23, %c0_24] : memref<8x128xf32, #tpu.memory_space<vmem>>, vector<8x128xf32>
      tpu.vector_store %arg6[%c0_23, %c0_24], %43 {strides = array<i32>} : memref<8x128xf32, #tpu.memory_space<vmem>>, vector<8x128xf32>,
    } else {
    }
    %c16_i32_16 = arith.constant 16 : i32
    %36 = arith.cmpi eq, %arg0, %c16_i32_16 : i32
    %37 = arith.extui %36 : i1 to i32
    %c0_i32_17 = arith.constant 0 : i32
    %38 = arith.cmpi ne, %37, %c0_i32_17 : i32
    scf.if %38 {
      %39 = vector.broadcast %10 : i32 to vector<4x8x128xi32>
      %40 = arith.cmpi sge, %22, %39 : vector<4x8x128xi32>
      %c0_18 = arith.constant 0 : index
      %c0_19 = arith.constant 0 : index
      %41 = vector.load %arg5[%c0_18, %c0_19] : memref<8x128xi32, #tpu.memory_space<vmem>>, vector<8x128xi32>
      %42 = arith.extui %40 : vector<4x8x128xi1> to vector<4x8x128xi32>
      %cst = arith.constant dense<0> : vector<8x128xi32>
      %43 = vector.multi_reduction <add>, %42, %cst [0] : vector<4x8x128xi32> to vector<8x128xi32>
      %44 = arith.addi %41, %43 : vector<8x128xi32>
      %c0_20 = arith.constant 0 : index
      %c0_21 = arith.constant 0 : index
      %45 = vector.load %arg5[%c0_20, %c0_21] : memref<8x128xi32, #tpu.memory_space<vmem>>, vector<8x128xi32>
      tpu.vector_store %arg5[%c0_20, %c0_21], %44 {strides = array<i32>} : memref<8x128xi32, #tpu.memory_space<vmem>>, vector<8x128xi32>,
      %c0_22 = arith.constant 0 : index
      %c0_23 = arith.constant 0 : index
      %46 = vector.load %arg6[%c0_22, %c0_23] : memref<8x128xf32, #tpu.memory_space<vmem>>, vector<8x128xf32>
      %cst_24 = arith.constant 0.000000e+00 : f32
      %47 = vector.broadcast %cst_24 : f32 to vector<4x8x128xf32>
      %48 = arith.select %40, %20, %47 : vector<4x8x128xi1>, vector<4x8x128xf32>
      %cst_25 = arith.constant dense<0.000000e+00> : vector<8x128xf32>
      %49 = vector.multi_reduction <add>, %48, %cst_25 [0] : vector<4x8x128xf32> to vector<8x128xf32>
      %50 = arith.addf %46, %49 : vector<8x128xf32>
      %c0_26 = arith.constant 0 : index
      %c0_27 = arith.constant 0 : index
      %51 = vector.load %arg6[%c0_26, %c0_27] : memref<8x128xf32, #tpu.memory_space<vmem>>, vector<8x128xf32>
      tpu.vector_store %arg6[%c0_26, %c0_27], %50 {strides = array<i32>} : memref<8x128xf32, #tpu.memory_space<vmem>>, vector<8x128xf32>,
    } else {
    }
    return
  }
  func.func @transform_0(%arg0: i32, %arg1: i32, %arg2: memref<1xi32, #tpu.memory_space<smem>>) -> (i32, i32) {
    %c0_i32 = arith.constant 0 : i32
    %c0_i32_0 = arith.constant 0 : i32
    return %arg1, %c0_i32 : i32, i32
  }
  func.func @transform_1(%arg0: i32, %arg1: i32, %arg2: memref<1xi32, #tpu.memory_space<smem>>) -> (i32, i32) {
    %c0_i32 = arith.constant 0 : i32
    %c0_i32_0 = arith.constant 0 : i32
    %c0_i32_1 = arith.constant 0 : i32
    return %c0_i32, %c0_i32_0 : i32, i32
  }
  func.func @transform_2(%arg0: i32, %arg1: i32, %arg2: memref<1xi32, #tpu.memory_space<smem>>) -> (i32, i32) {
    %c0_i32 = arith.constant 0 : i32
    %c0_i32_0 = arith.constant 0 : i32
    %c0_i32_1 = arith.constant 0 : i32
    return %c0_i32, %c0_i32_0 : i32, i32
  }
  func.func @transform_3(%arg0: i32, %arg1: i32, %arg2: memref<1xi32, #tpu.memory_space<smem>>) -> (i32, i32) {
    %c0_i32 = arith.constant 0 : i32
    %c0_i32_0 = arith.constant 0 : i32
    %c0_i32_1 = arith.constant 0 : i32
    return %c0_i32, %c0_i32_0 : i32, i32
  }
}

</mosaic_0001>

<bundles_post_ra>
// kernel: squeeze.2
= control target key start
LH: loop header
LB: loop body
LE: loop exit
PB: predicated region body
PF: predicated region fallthrough
CT: control target
= control target key end

     0   :  { %s69_s8 = smov 112   ;;  %s70_s11 = smov 80   ;;  %vm3_vm0 = vcmask 130048   ;;  %vm9_vm1 = vcmask 1048448   ;;  %vm15_vm2 = vcmask 917248   ;;  %vm21_vm3 = vcmask 786048   ;;  %s113_s0 = inlined_call_operand.vmem [shape: f32[2,1,16,16], index: 0, kind: input, shape index: {}]   ;;  %s114_s1 = inlined_call_operand.vmem [shape: f32[512], index: 1, kind: output, shape index: {}]  }
   0x1   :  { %v55_v0 = vld [vmem:[%s113_s0 + $0x7] ss:$8 sm:$0xf]   ;;  %v57_v1 = vld [vmem:[%s113_s0 + $0x5] ss:$8 sm:$0xf]  }
   0x2   :  { %7 = vrot.lane.b32.xlu0 %v55_v0, %s69_s8  ;;  %19 = vrot.lane.b32.xlu1 %v57_v1, %s70_s11  ;;  %v56_v2 = vld [vmem:[%s113_s0 + $0x6] ss:$8 sm:$0xf]   ;;  %v58_v3 = vld [vmem:[%s113_s0 + $0x4] ss:$8 sm:$0xf]  }
   0x3   :  { %s71_s16 = smov 96   ;;  %v2_v4 = vld [vmem:[%s113_s0] ss:$8 sm:$0xf]   ;;  %s72_s19 = smov 64   ;;  %vm27_vm4 = vcmask 654848  }
   0x4   :  { %v59_v5 = vld [vmem:[%s113_s0 + $0x3] ss:$8 sm:$0xf]   ;;  %4 = vst.msk [vmem:[#allocation0] sm:$0xf] %vm3_vm0, %v2_v4   ;;  %s73_s24 = smov 48  }
   0x5   :  { %v60_v6 = vld [vmem:[%s113_s0 + $0x2] ss:$8 sm:$0xf]   ;;  %s74_s25 = smov 32   ;;  %vm33_vm5 = vcmask 523648   ;;  %vm39_vm6 = vcmask 392448  }
   0x6   :  { %13 = vrot.lane.b32.xlu0 %v56_v2, %s71_s16  ;;  %25 = vrot.lane.b32.xlu1 %v58_v3, %s72_s19  ;;  %v61_v7 = vld [vmem:[%s113_s0 + $0x1] ss:$8 sm:$0xf]   ;;  %s75_s0 = smov 16   ;;  %vm45_vm7 = vcmask 261248  }
   0xa   :  { %31 = vrot.lane.b32.xlu0 %v59_v5, %s73_s24  ;;  %37 = vrot.lane.b32.xlu1 %v60_v6, %s74_s25 }
   0xe   :  { %43 = vrot.lane.b32.xlu0 %v61_v7, %s75_s0 }
  0x74   :  { %v8_v8 = vpop.permute.xlu0 %7   ;;  %v20_v9 = vpop.permute.xlu1 %19  }
  0x75   :  { %10 = vst.msk [vmem:[#allocation0] sm:$0xf] %vm9_vm1, %v8_v8  }
  0x78   :  { %v14_v10 = vpop.permute.xlu0 %13   ;;  %v26_v11 = vpop.permute.xlu1 %25  }
  0x79   :  { %16 = vst.msk [vmem:[#allocation0] sm:$0xf] %vm15_vm2, %v14_v10  }
  0x7a   :  { %22 = vst.msk [vmem:[#allocation0] sm:$0xf] %vm21_vm3, %v20_v9  }
  0x7b   :  { %28 = vst.msk [vmem:[#allocation0] sm:$0xf] %vm27_vm4, %v26_v11  }
  0x7c   :  { %v32_v12 = vpop.permute.xlu0 %31   ;;  %v38_v13 = vpop.permute.xlu1 %37  }
  0x7d   :  { %34 = vst.msk [vmem:[#allocation0] sm:$0xf] %vm33_vm5, %v32_v12  }
  0x7e   :  { %40 = vst.msk [vmem:[#allocation0] sm:$0xf] %vm39_vm6, %v38_v13  }
  0x80   :  { %v44_v14 = vpop.permute.xlu0 %43  }
  0x81   :  { %46 = vst.msk [vmem:[#allocation0] sm:$0xf] %vm45_vm7, %v44_v14  }
  0x88   :  { %v51_v15 = vld [vmem:[#allocation0] sm:$0xf] }
  0x89   :  { %54 = vst [vmem:[%s114_s1] sm:$0xf] %v51_v15 }

// kernel: balance_cross_entropy_loss.2
= control target key start
LH: loop header
LB: loop body
LE: loop exit
PB: predicated region body
PF: predicated region fallthrough
CT: control target
= control target key end

     0   :  { %s262_s0 = inlined_call_operand.vmem [shape: f32[32,128], index: 0, kind: input, shape index: {}]   ;;  %s263_s1 = inlined_call_operand.vmem [shape: u8[32,128], index: 1, kind: input, shape index: {}]   ;;  %s264_s2 = inlined_call_operand.vmem [shape: u8[32,128], index: 2, kind: input, shape index: {}]   ;;  %s265_s5 = inlined_call_operand.vmem [shape: f32[1,8,128], index: 5, kind: output, shape index: {2}]   ;;  %s266_s6 = inlined_call_operand.vmem [shape: f32[1,8,128], index: 6, kind: output, shape index: {3}]   ;;  %s267_s3 = inlined_call_operand.vmem [shape: f32[32,128], index: 3, kind: output, shape index: {0}]   ;;  %s268_s4 = inlined_call_operand.vmem [shape: f32[1,8,128], index: 4, kind: output, shape index: {1}]  }
   0x1   :  { %v18_v0 = vld [vmem:[%s262_s0] sm:$0xff]  ;;  %v19_v6 = vld [vmem:[%s262_s0 + $0x8] sm:$0xff]  ;;  %v20_v12 = vld [vmem:[%s262_s0 + $0x10] sm:$0xff] }
   0x2   :  { %v22_v1 = vld [vmem:[%s263_s1] sm:$0xff]  ;;  %148 = vlog2.f32 %v18_v0  ;;  %v72_v5 = vsub.f32 1.0, %v18_v0  ;;  %v73_v9 = vsub.f32 1.0, %v19_v6  ;;  %v74_v23 = vsub.f32 1.0, %v20_v12  ;;  %v21_v25 = vld [vmem:[%s262_s0 + $0x18] sm:$0xff] }
   0x3   :  { %v35_v2 = vld [vmem:[%s264_s2] sm:$0xff]  ;;  %v23_v3 = vunpack.c.0.s8 %v22_v1  ;;  %v24_v7 = vunpack.c.1.s8 %v22_v1  ;;  %150 = vlog2.f32 %v19_v6  ;;  %v25_v13 = vunpack.c.2.s8 %v22_v1 }
   0x4   :  { %v36_v4 = vunpack.c.0.s8 %v35_v2  ;;  %v37_v8 = vunpack.c.1.s8 %v35_v2  ;;  %152 = vlog2.f32 %v72_v5  ;;  %v38_v16 = vunpack.c.2.s8 %v35_v2 }
   0x5   :  { %v27_v10 = vand.u32 255, %v23_v3  ;;  %v28_v14 = vand.u32 255, %v24_v7  ;;  %154 = vlog2.f32 %v73_v9  ;;  %v29_v19 = vand.u32 255, %v25_v13 }
   0x6   :  { %v40_v11 = vand.u32 255, %v36_v4  ;;  %v41_v15 = vand.u32 255, %v37_v8  ;;  %156 = vlog2.f32 %v20_v12  ;;  %v42_v22 = vand.u32 255, %v38_v16 }
   0x7   :  { %v31_v17 = vcvt.s32.f32 %v27_v10  ;;  %v32_v20 = vcvt.s32.f32 %v28_v14  ;;  %v26_v26 = vunpack.c.3.s8 %v22_v1  ;;  %v33_v28 = vcvt.s32.f32 %v29_v19 }
   0x8   :  { %v44_v18 = vcvt.s32.f32 %v40_v11  ;;  %v45_v21 = vcvt.s32.f32 %v41_v15  ;;  %v46_v29 = vcvt.s32.f32 %v42_v22  ;;  %158 = vlog2.f32 %v74_v23 }
   0x9   :  { %v30_v31 = vand.u32 255, %v26_v26  ;;  %v39_v32 = vunpack.c.3.s8 %v35_v2  ;;  %160 = vlog2.f32 %v21_v25  ;;  %v75_v35 = vsub.f32 1.0, %v21_v25 }
   0xa   :  { %v214_v24 = vmul.f32 %v44_v18, %v31_v17  ;;  %v219_v27 = vmul.f32 %v45_v21, %v32_v20  ;;  %v223_v34 = vmul.f32 %v46_v29, %v33_v28  ;;  %v56_v49 = vsub.f32 1.0, %v31_v17 }
   0xb   :  { %v43_v36 = vand.u32 255, %v39_v32  ;;  %162 = vlog2.f32 %v75_v35  ;;  %v34_v40 = vcvt.s32.f32 %v30_v31  ;;  %v57_v57 = vsub.f32 1.0, %v32_v20 }
   0xc   :  { %v52_v30 = vsub.f32 %v44_v18, %v214_v24  ;;  %v53_v33 = vsub.f32 %v45_v21, %v219_v27  ;;  %v124_v37 = vadd.f32 %v219_v27, %v214_v24  ;;  %v228_v38 = vsub.f32 %v46_v29, %v223_v34 }
   0xd   :  { %v47_v41 = vcvt.s32.f32 %v43_v36  ;;  %v58_v6 = vsub.f32 1.0, %v33_v28  ;;  %v59_v16 = vsub.f32 1.0, %v34_v40 }
   0xe   :  { %v128_v39 = vadd.f32 %v53_v33, %v52_v30  ;;  %v125_v42 = vadd.f32 %v124_v37, %v223_v34 }
   0xf   :  { %v149_v43 = vpop.eup %148  ;;  %v231_v46 = vmul.f32 %v47_v41, %v34_v40 }
  0x10   :  { %v151_v44 = vpop.eup %150  ;;  %v61_v45 = vmul.f32 0.6931472, %v149_v43  ;;  %v129_v47 = vadd.f32 %v128_v39, %v228_v38 }
  0x11   :  { %v153_v48 = vpop.eup %152  ;;  %v63_v50 = vmul.f32 0.6931472, %v151_v44  ;;  %v55_v54 = vsub.f32 %v47_v41, %v231_v46  ;;  %v126_v55 = vadd.f32 %v125_v42, %v231_v46 }
  0x12   :  { %v155_v51 = vpop.eup %154  ;;  %v68_v52 = vmax.f32 %v61_v45, -100.0  ;;  %v77_v53 = vmul.f32 0.6931472, %v153_v48 }
  0x13   :  { %v157_v56 = vpop.eup %156  ;;  %v69_v58 = vmax.f32 %v63_v50, -100.0  ;;  %v79_v59 = vmul.f32 0.6931472, %v155_v51  ;;  %127 = vst [vmem:[%s265_s5] sm:$0xff] %v126_v55  ;;  %v130_v63 = vadd.f32 %v129_v47, %v55_v54 }
  0x14   :  { %v84_v60 = vmax.f32 %v77_v53, -100.0  ;;  %v88_v61 = vmul.f32 %v68_v52, %v31_v17  ;;  %v65_v62 = vmul.f32 0.6931472, %v157_v56 }
  0x15   :  { %v85_v0 = vmax.f32 %v79_v59, -100.0  ;;  %v89_v1 = vmul.f32 %v69_v58, %v32_v20  ;;  %v159_v2 = vpop.eup %158  ;;  %131 = vst [vmem:[%s266_s6] sm:$0xff] %v130_v63 }
  0x16   :  { %v92_v3 = vmul.f32 %v84_v60, %v56_v49  ;;  %v70_v4 = vmax.f32 %v65_v62, -100.0  ;;  %v81_v7 = vmul.f32 0.6931472, %v159_v2  ;;  %v161_v8 = vpop.eup %160 }
  0x17   :  { %v93_v5 = vmul.f32 %v85_v0, %v57_v57  ;;  %v67_v13 = vmul.f32 0.6931472, %v161_v8 }
  0x18   :  { %v96_v9 = vadd.f32 %v92_v3, %v88_v61  ;;  %v86_v11 = vmax.f32 %v81_v7, -100.0  ;;  %v90_v12 = vmul.f32 %v70_v4, %v33_v28  ;;  %v163_v14 = vpop.eup %162 }
  0x19   :  { %v97_v10 = vadd.f32 %v93_v5, %v89_v1  ;;  %v71_v19 = vmax.f32 %v67_v13, -100.0  ;;  %v83_v20 = vmul.f32 0.6931472, %v163_v14 }
  0x1a   :  { %v100_v15 = vsub.f32 0.0, %v96_v9  ;;  %v94_v18 = vmul.f32 %v86_v11, %v58_v6 }
  0x1b   :  { %v101_v17 = vsub.f32 0.0, %v97_v10  ;;  %v87_v29 = vmax.f32 %v83_v20, -100.0  ;;  %v91_v32 = vmul.f32 %v71_v19, %v34_v40 }
  0x1c   :  { %v104_v21 = vmul.f32 %v100_v15, %v52_v30  ;;  %v116_v22 = vmul.f32 %v100_v15, %v214_v24  ;;  %v98_v26 = vadd.f32 %v94_v18, %v90_v12 }
  0x1d   :  { %v105_v23 = vmul.f32 %v101_v17, %v53_v33  ;;  %v117_v25 = vmul.f32 %v101_v17, %v219_v27  ;;  %v95_v36 = vmul.f32 %v87_v29, %v59_v16 }
  0x1e   :  { %v108_v31 = vand.u32 2147483647, %v104_v21  ;;  %v102_v28 = vsub.f32 0.0, %v98_v26 }
  0x1f   :  { %v109_v35 = vand.u32 2147483647, %v105_v23  ;;  %v120_v37 = vadd.f32 %v117_v25, %v116_v22  ;;  %v99_v30 = vadd.f32 %v95_v36, %v91_v32 }
  0x20   :  { %112 = vst [vmem:[%s267_s3] sm:$0xff] %v108_v31  ;;  %v106_v24 = vmul.f32 %v102_v28, %v228_v38  ;;  %v118_v27 = vmul.f32 %v102_v28, %v223_v34 }
  0x21   :  { %113 = vst [vmem:[%s267_s3 + $0x8] sm:$0xff] %v109_v35  ;;  %v103_v39 = vsub.f32 0.0, %v99_v30 }
  0x22   :  { %v110_v33 = vand.u32 2147483647, %v106_v24  ;;  %v121_v40 = vadd.f32 %v120_v37, %v118_v27 }
  0x23   :  { %v107_v41 = vmul.f32 %v103_v39, %v55_v54  ;;  %v119_v42 = vmul.f32 %v103_v39, %v231_v46 }
  0x24   :  { %114 = vst [vmem:[%s267_s3 + $0x10] sm:$0xff] %v110_v33 }
  0x25   :  { %v111_v43 = vand.u32 2147483647, %v107_v41  ;;  %v122_v44 = vadd.f32 %v121_v40, %v119_v42 }
  0x27   :  { %115 = vst [vmem:[%s267_s3 + $0x18] sm:$0xff] %v111_v43  ;;  %123 = vst [vmem:[%s268_s4] sm:$0xff] %v122_v44 }

// kernel: balance_cross_entropy_loss.3
= control target key start
LH: loop header
LB: loop body
LE: loop exit
PB: predicated region body
PF: predicated region fallthrough
CT: control target
= control target key end

     0   :  { %s534_s17 = smov 0   ;;  %s536_s18 = smov 0   ;;  %s664_s0 = inlined_call_operand.<no memory space> [shape: s32[1], index: 0, kind: input, shape index: {}]   ;;  %s665_s1 = inlined_call_operand.vmem [shape: f32[32,128], index: 1, kind: input, shape index: {}]   ;;  %s666_s2 = inlined_call_operand.vmem [shape: s32[8,128], index: 2, kind: output, shape index: {0}]   ;;  %s667_s3 = inlined_call_operand.vmem [shape: s32[8,128], index: 3, kind: output, shape index: {1}]   ;;  %s668_s4 = inlined_call_operand.vmem [shape: f32[8,128], index: 4, kind: output, shape index: {2}]  }
   0x1   :  { %10 = sst [smem:[#allocation5]] %s664_s0  ;;  %s538_s19 = smov 0  }
   0x2 LB: > { %s28_s0 = sadd.s32 1, %s493_s18  ;;  %p424_p0 = scmp.ge.s32.totalorder %s497_s19, 1  ;;  %s497_s19 = sphi %s538_s19, %s16_s19   ;;  %s493_s18 = sphi %s536_s18, %s670_s18   ;;  %s489_s17 = sphi %s534_s17, %s669_s17  }
   0x3   : > { %p30_p1 = scmp.ge.s32.totalorder %s28_s0, 17  ;;  %p142_p2 = scmp.lt.s32.totalorder %s497_s19, 18 }
   0x5   : > { %s672_s0 = smov (%p30_p1, %s28_s0), 0  ;;  %p143_p3 = pnand %p424_p0, %p142_p2 }
   0x6   : > { %s554_s20 = sld [smem:[#allocation5]] (!%p143_p3)  ;;  %p168_p4 = scmp.eq.s32.totalorder (!%p143_p3), %s489_s17, 0 }
   0x7   : > { %146 = sbr.rel (%p143_p3) target bundleno = 296 (0x128), region = 24  ;;  %s500_s29 = smov (!%p143_p3), 0  }
   0x8   : > { %p202_p5 = scmp.lt.s32.totalorder (!%p143_p3), %s489_s17, 16  ;;  %s501_s30 = smov (!%p143_p3), 2139095040  }
   0x9   : > { %p427_p6 = scmp.ge.s32.totalorder (!%p143_p3), %s489_s17, 16 }
   0xc   : > { %v560_v0 = vld [vmem:[%s665_s1] sm:$0xff]  ;;  %v565_v1 = vld [vmem:[%s665_s1 + $0x8] sm:$0xff]  ;;  %v499_v2 = vmov 0   ;;  %v570_v3 = vld [vmem:[%s665_s1 + $0x10] sm:$0xff]  ;;  %442 = sst [smem:[#allocation2]] (%p168_p4), %s500_s29 }
   0xd   : > { %181 = vst [vmem:[#allocation3 + $0x10] sm:$0xff] %v499_v2  ;;  %182 = vst [vmem:[#allocation3] sm:$0xff] %v499_v2  ;;  %v575_v4 = vld [vmem:[%s665_s1 + $0x18] sm:$0xff]  ;;  %443 = sst [smem:[#allocation2 + $0x1]] (%p168_p4), %s501_s30 }
   0xe   : > { %183 = vst [vmem:[#allocation3 + $0x8] sm:$0xff] %v499_v2  ;;  %s578_s5 = sld [smem:[#allocation2]] }
   0xf   : > { %s580_s6 = sld [smem:[#allocation2 + $0x1]] }
  0x15   : > { %s186_s7 = ssub.s32 %s580_s6, %s578_s5 }
  0x16   : > { %s187_s8 = sshra.s32 %s186_s7, 1  ;;  %205 = sbr.rel (%p427_p6) target bundleno = 43 (0x2b), region = 36 }
  0x17   : > { %s585_s9 = sadd.s32 %s187_s8, %s578_s5  ;;  %s189_s10 = sshra.s32 %s187_s8, 1 }
  0x18   : > { %s588_s11 = sadd.s32 %s189_s10, %s578_s5  ;;  %s191_s12 = ssub.s32 %s186_s7, %s187_s8 }
  0x19   : > { %s192_s13 = sshra.s32 %s191_s12, 1 }
  0x1a   : > { %s591_s14 = sadd.s32 %s192_s13, %s585_s9 }
  0x1b   : > { %v207_v5 = vstv %s588_s11  ;;  %v223_v6 = vstv %s585_s9  ;;  %v239_v7 = vstv %s591_s14  ;;  %v502_v8 = vmov 0   ;;  %v206_v15 = vld [vmem:[#allocation3 + $0x10] sm:$0xff]  ;;  %v222_v24 = vld [vmem:[#allocation3] sm:$0xff]  ;;  %v238_v33 = vld [vmem:[#allocation3 + $0x8] sm:$0xff] }
  0x1c   : > { %vm208_vm0 = vcmp.ge.s32.totalorder %v560_v0, %v207_v5  ;;  %vm209_vm1 = vcmp.ge.s32.totalorder %v565_v1, %v207_v5  ;;  %vm210_vm2 = vcmp.ge.s32.totalorder %v570_v3, %v207_v5  ;;  %vm211_vm3 = vcmp.ge.s32.totalorder %v575_v4, %v207_v5 }
  0x1d   : > { %v212_v9 = vsel %vm208_vm0, 1, %v502_v8  ;;  %v213_v10 = vsel %vm209_vm1, 1, %v502_v8  ;;  %v214_v11 = vsel %vm210_vm2, 1, %v502_v8  ;;  %v215_v12 = vsel %vm211_vm3, 1, %v502_v8 }
  0x1e   : > { %v216_v13 = vadd.s32 %v213_v10, %v212_v9  ;;  %v217_v14 = vadd.s32 %v215_v12, %v214_v11  ;;  %vm224_vm4 = vcmp.ge.s32.totalorder %v560_v0, %v223_v6  ;;  %vm225_vm5 = vcmp.ge.s32.totalorder %v565_v1, %v223_v6 }
  0x1f   : > { %vm226_vm6 = vcmp.ge.s32.totalorder %v570_v3, %v223_v6  ;;  %vm227_vm7 = vcmp.ge.s32.totalorder %v575_v4, %v223_v6  ;;  %v228_v16 = vsel %vm224_vm4, 1, %v502_v8  ;;  %v229_v17 = vsel %vm225_vm5, 1, %v502_v8 }
  0x20   : > { %v218_v18 = vadd.s32 %v217_v14, %v216_v13  ;;  %v230_v19 = vsel %vm226_vm6, 1, %v502_v8  ;;  %v231_v20 = vsel %vm227_vm7, 1, %v502_v8  ;;  %v232_v21 = vadd.s32 %v229_v17, %v228_v16 }
  0x21   : > { %v233_v22 = vadd.s32 %v231_v20, %v230_v19  ;;  %vm240_vm8 = vcmp.ge.s32.totalorder %v560_v0, %v239_v7  ;;  %vm241_vm9 = vcmp.ge.s32.totalorder %v565_v1, %v239_v7  ;;  %vm242_vm10 = vcmp.ge.s32.totalorder %v570_v3, %v239_v7 }
  0x22   : > { %v219_v23 = vadd.s32 %v218_v18, %v206_v15  ;;  %vm243_vm11 = vcmp.ge.s32.totalorder %v575_v4, %v239_v7  ;;  %v244_v25 = vsel %vm240_vm8, 1, %v502_v8  ;;  %v245_v26 = vsel %vm241_vm9, 1, %v502_v8 }
  0x23   : > { %v234_v27 = vadd.s32 %v233_v22, %v232_v21  ;;  %v246_v28 = vsel %vm242_vm10, 1, %v502_v8  ;;  %v247_v29 = vsel %vm243_vm11, 1, %v502_v8  ;;  %v248_v30 = vadd.s32 %v245_v26, %v244_v25 }
  0x24   : > { %220 = vst [vmem:[#allocation3 + $0x10] sm:$0xff] %v219_v23  ;;  %v249_v31 = vadd.s32 %v247_v29, %v246_v28 }
  0x25   : > { %v235_v32 = vadd.s32 %v234_v27, %v222_v24 }
  0x26   : > { %v250_v34 = vadd.s32 %v249_v31, %v248_v30 }
  0x27   : > { %236 = vst [vmem:[#allocation3] sm:$0xff] %v235_v32 }
  0x28   : > { %v251_v35 = vadd.s32 %v250_v34, %v238_v33 }
  0x2a   : > { %252 = vst [vmem:[#allocation3 + $0x8] sm:$0xff] %v251_v35 }
  0x2b PF: > { %256 = sbr.rel (!%p202_p5) target bundleno = 269 (0x10d), region = 40  ;;  %v257_v37 = vld [vmem:[#allocation3 + $0x10] sm:$0xff] (%p202_p5) }
  0x2c   : > { %v259_v39 = vshrl.u32 (%p202_p5), %v257_v37, 16  ;;  %v258_v41 = vand.u32 (%p202_p5), 65535, %v257_v37 }
  0x2e   : > { %v278_v36 = vld [vmem:[#allocation3] sm:$0xff] (%p202_p5)  ;;  %v261_v44 = vcvt.s32.f32 (%p202_p5), %v259_v39  ;;  %v260_v46 = vcvt.s32.f32 (%p202_p5), %v258_v41 }
  0x2f   : > { %v280_v38 = vshrl.u32 (%p202_p5), %v278_v36, 16  ;;  %v279_v40 = vand.u32 (%p202_p5), 65535, %v278_v36 }
  0x30   : > { %264 = vadd.xlane.f32.xlu0 %v261_v44 }
  0x31   : > { %v299_v42 = vld [vmem:[#allocation3 + $0x8] sm:$0xff]  ;;  %v282_v43 = vcvt.s32.f32 %v280_v38  ;;  %v281_v45 = vcvt.s32.f32 %v279_v40 }
  0x32   : > { %v301_v47 = vshrl.u32 %v299_v42, 16  ;;  %v300_v48 = vand.u32 65535, %v299_v42 }
  0x33   : > { %285 = vadd.xlane.f32.xlu1 %v282_v43 }
  0x34   : > { %262 = vadd.xlane.f32.xlu0 %v260_v46  ;;  %v303_v49 = vcvt.s32.f32 %v301_v47  ;;  %v302_v50 = vcvt.s32.f32 %v300_v48 }
  0x37   : > { %283 = vadd.xlane.f32.xlu1 %v281_v45 }
  0x38   : > { %306 = vadd.xlane.f32.xlu0 %v303_v49 }
  0x3b   : > { %304 = vadd.xlane.f32.xlu1 %v302_v50 }
  0xb9   : > { %v265_v52 = vpop.xlane.xlu0 %264 }
  0xba   : > { %v267_v54 = vcvt.f32.s32 %v265_v52 }
  0xbc   : > { %v286_v51 = vpop.xlane.xlu1 %285  ;;  %v268_v58 = vshll.u32 %v267_v54, 16 }
  0xbd   : > { %v288_v53 = vcvt.f32.s32 %v286_v51  ;;  %v263_v57 = vpop.xlane.xlu0 %262 }
  0xbe   : > { %v266_v60 = vcvt.f32.s32 %v263_v57 }
  0xbf   : > { %v289_v55 = vshll.u32 %v288_v53, 16 }
  0xc0   : > { %v284_v56 = vpop.xlane.xlu1 %283  ;;  %v269_v62 = vadd.s32 %v268_v58, %v266_v60 }
  0xc1   : > { %v287_v59 = vcvt.f32.s32 %v284_v56  ;;  %v307_v63 = vpop.xlane.xlu0 %306 }
  0xc2   : > { %v270_v6 = vrot.slane %v269_v62, 4  ;;  %v309_v7 = vcvt.f32.s32 %v307_v63 }
  0xc3   : > { %v290_v61 = vadd.s32 %v289_v55, %v287_v59 }
  0xc4   : > { %v305_v2 = vpop.xlane.xlu1 %304  ;;  %v310_v10 = vshll.u32 %v309_v7, 16  ;;  %v271_v11 = vadd.s32 %v270_v6, %v269_v62 }
  0xc5   : > { %v291_v5 = vrot.slane %v290_v61, 4  ;;  %v308_v8 = vcvt.f32.s32 %v305_v2 }
  0xc6   : > { %v272_v13 = vrot.slane %v271_v11, 2 }
  0xc7   : > { %v292_v9 = vadd.s32 %v291_v5, %v290_v61  ;;  %v311_v12 = vadd.s32 %v310_v10, %v308_v8 }
  0xc8   : > { %v273_v16 = vadd.s32 %v272_v13, %v271_v11 }
  0xc9   : > { %v293_v14 = vrot.slane %v292_v9, 2  ;;  %v312_v15 = vrot.slane %v311_v12, 4 }
  0xca   : > { %v274_v19 = vrot.slane %v273_v16, 1 }
  0xcb   : > { %v294_v17 = vadd.s32 %v293_v14, %v292_v9  ;;  %v313_v18 = vadd.s32 %v312_v15, %v311_v12 }
  0xcc   : > { %v275_v21 = vadd.s32 %v274_v19, %v273_v16 }
  0xcd   : > { %v295_v20 = vrot.slane %v294_v17, 1  ;;  %v314_v23 = vrot.slane %v313_v18, 2 }
  0xce   : > { %436 = vpush %v275_v21 }
  0xcf   : > { %v296_v22 = vadd.s32 %v295_v20, %v294_v17  ;;  %v315_v24 = vadd.s32 %v314_v23, %v313_v18 }
  0xd1   : > { %438 = vpush %v296_v22  ;;  %v316_v25 = vrot.slane %v315_v24, 1 }
  0xd3   : > { %v317_v26 = vadd.s32 %v316_v25, %v315_v24 }
  0xd5   : > { %440 = vpush %v317_v26 }
  0xff   : > { %s437_s15 = spop %436 }
 0x100   : > { %p321_p7 = scmp.ge.s32.totalorder %s437_s15, %s554_s20 }
 0x102   : > { %s439_s16 = spop %438 }
 0x103   : > { %s322_s21 = scalar_select %p321_p7, %s588_s11, %s578_s5 }
 0x104   : > { %p320_p8 = scmp.ge.s32.totalorder %s439_s16, %s554_s20 }
 0x105   : > { %s325_s22 = scalar_select %p321_p7, %s585_s9, %s588_s11 }
 0x106   : > { %s674_s9 = smov (!%p320_p8, %s585_s9), %s322_s21  ;;  %s441_s23 = spop %440 }
 0x107   : > { %p319_p9 = scmp.ge.s32.totalorder %s441_s23, %s554_s20 }
 0x108   : > { %s326_s24 = scalar_select %p320_p8, %s591_s14, %s325_s22 }
 0x109   : > { %s676_s14 = smov (!%p319_p9, %s591_s14), %s674_s9 }
 0x10a   : > { %s327_s25 = scalar_select %p319_p9, %s580_s6, %s326_s24 }
 0x10b   : > { %329 = sst [smem:[#allocation2]] %s676_s14 }
 0x10c   : > { %331 = sst [smem:[#allocation2 + $0x1]] %s327_s25 }
 0x10d PF: > { %p332_p10 = scmp.eq.s32.totalorder %s489_s17, 16 }
 0x10e   : > { %v337_v27 = vstv (%p332_p10), %s578_s5  ;;  %v503_v28 = vmov (%p332_p10), 0   ;;  %v504_v29 = vmov (%p332_p10), 0.0  }
 0x10f   : > { %336 = sbr.rel (!%p332_p10) target bundleno = 276 (0x114), region = 44  ;;  %338 = vst [vmem:[%s666_s2] sm:$0xff] (%p332_p10), %v337_v27  ;;  %339 = vst [vmem:[%s667_s3] sm:$0xff] (%p332_p10), %v503_v28 }
 0x110   : > { %340 = vst [vmem:[%s668_s4] sm:$0xff] (%p332_p10), %v504_v29 }
 0x114 PF: > { %p430_p11 = scmp.ne.s32.totalorder %s489_s17, 16 }
 0x116   : > { %343 = sbr.rel (%p430_p11) target bundleno = 296 (0x128), region = 48 }
 0x11b   : > { %v344_v30 = vstv %s580_s6  ;;  %v505_v31 = vmov 0   ;;  %v349_v40 = vld [vmem:[%s667_s3] sm:$0xff] }
 0x11c   : > { %vm345_vm12 = vcmp.ge.s32.totalorder %v560_v0, %v344_v30  ;;  %vm346_vm13 = vcmp.ge.s32.totalorder %v565_v1, %v344_v30  ;;  %vm347_vm14 = vcmp.ge.s32.totalorder %v570_v3, %v344_v30  ;;  %vm348_vm15 = vcmp.ge.s32.totalorder %v575_v4, %v344_v30  ;;  %v359_v47 = vld [vmem:[%s668_s4] sm:$0xff] }
 0x11d   : > { %v350_v32 = vsel %vm345_vm12, 1, %v505_v31  ;;  %v351_v33 = vsel %vm346_vm13, 1, %v505_v31  ;;  %v352_v34 = vsel %vm347_vm14, 1, %v505_v31  ;;  %v353_v35 = vsel %vm348_vm15, 1, %v505_v31 }
 0x11e   : > { %v354_v36 = vadd.s32 %v351_v33, %v350_v32  ;;  %v355_v37 = vadd.s32 %v353_v35, %v352_v34  ;;  %v360_v38 = vsel %vm345_vm12, %v560_v0, 0.0  ;;  %v361_v39 = vsel %vm346_vm13, %v565_v1, 0.0 }
 0x11f   : > { %v362_v41 = vsel %vm347_vm14, %v570_v3, 0.0  ;;  %v364_v42 = vadd.f32 %v361_v39, %v360_v38  ;;  %v363_v44 = vsel %vm348_vm15, %v575_v4, 0.0 }
 0x120   : > { %v356_v43 = vadd.s32 %v355_v37, %v354_v36 }
 0x121   : > { %v365_v45 = vadd.f32 %v364_v42, %v362_v41 }
 0x122   : > { %v357_v46 = vadd.s32 %v356_v43, %v349_v40 }
 0x123   : > { %v366_v48 = vadd.f32 %v365_v45, %v363_v44 }
 0x124   : > { %358 = vst [vmem:[%s667_s3] sm:$0xff] %v357_v46 }
 0x125   : > { %v367_v0 = vadd.f32 %v366_v48, %v359_v47 }
 0x127   : > { %368 = vst [vmem:[%s668_s4] sm:$0xff] %v367_v0 }
 0x128 PF: > { %s16_s19 = sadd.s32 1, %s497_s19   ;;  %s669_s17 = smov %s493_s18 }
 0x129   : > { %p13_p12 = scmp.ge.s32.totalorder %s16_s19, 19   ;;  %s670_s18 = smov %s672_s0 }
 0x12b   :  { %15 = sbr.rel (!%p13_p12) target bundleno = 2 (0x2), region = 98 }

</bundles_post_ra>
